<compile_context>
chip_gen: v5e
topology: v5e:2x2
jax: 0.10.0
libtpu: 0.0.40
codegen_flags: <defaults>
</compile_context>

<pallas_src>
import functools

import numpy as np
import jax
import jax.numpy as jnp
from jax.experimental import pallas as pl
from jax.experimental.pallas import tpu as pltpu

PATCH = 4              # PatchGAN patch size (conv kernel == stride == 4)
HIDDEN = 8             # hidden channels of the synthetic PatchGAN discriminator
COEF_SOD = 0.5
COEF_RES = 0.3
COEF_AVG = 1.0
NORM_TYPE = "mean"     # 'mean' (default) or 'set_sum_1'
PT_MAX = 4096          # max patches per lane-tile (4096*K*4B ~ 1 MiB @ K=64; x2 buffers)


# ---------------------------------------------------------------------------
# Pallas kernel
#   grid = (B // Bt, num_P_tiles);  P-tile axis is a reduction ("arbitrary")
#   xp block   : [Bt, K, PT]   (patches on lanes)
#   w_comb     : [NC, K]       NC = HIDDEN + 16 + C   (single fused MXU weight)
#   output     : [Bt, 128]     per-batch scalar broadcast over one lane row
# ---------------------------------------------------------------------------
def _fused_predictor_kernel(xp_ref, wc_ref, b1_ref, w2_ref, b2_ref, bsod_ref,
                            o_ref, acc_p_ref, acc_w_ref,
                            *, C, P, PT, Bt):
    PP = PATCH * PATCH
    K = C * PP
    t = pl.program_id(1)

    @pl.when(t == 0)
    def _init():
        acc_p_ref[...] = jnp.zeros_like(acc_p_ref)
        acc_w_ref[...] = jnp.zeros_like(acc_w_ref)

    wc = wc_ref[...]                                  # [NC, K]   (f32 or bf16)
    b1 = b1_ref[...]                                  # [H, 1]
    w2 = w2_ref[...]                                  # [H, 1]

    prod_rows = []
    w_rows = []
    for i in range(Bt):                               # static unroll over local batch
        xp = xp_ref[i]                                # [K, PT]
        # --- single fused MXU pass over xp (D conv1 | SOD conv | channel mean) ---
        mm = jnp.dot(wc, xp, preferred_element_type=jnp.float32)       # [NC, PT]

        # D(x): 4x4/s4 conv + LeakyReLU(0.2) + 1x1 conv (VPU multiply-reduce).
        h1 = mm[0:HIDDEN, :] + b1                                      # [H, PT]
        h1 = jnp.where(h1 >= 0.0, h1, 0.2 * h1)
        score = jnp.sum(h1 * w2, axis=0, keepdims=True) + b2_ref[...]  # [1, PT]

        # wmp_sod(x): sigmoid(1x1 conv), then converter (4x4 block mean).
        sod = jax.nn.sigmoid(mm[HIDDEN:HIDDEN + PP, :] + bsod_ref[...])  # [PP, PT]
        sod_patch = jnp.mean(sod, axis=0, keepdims=True)                 # [1, PT]

        # wmp_res(x): mean_c |x - per-patch channel mean|, then block mean.
        # Pure VPU: channel mean comes out of the fused matmul; broadcast-subtract.
        cm = mm[HIDDEN + PP:HIDDEN + PP + C, :]                          # [C, PT]
        xp_f = xp.astype(jnp.float32)
        res_sum = jnp.zeros((1, PT), jnp.float32)
        for c in range(C):                                               # static, small C
            xc = xp_f[c * PP:(c + 1) * PP, :]                            # [PP, PT]
            res_sum = res_sum + jnp.sum(jnp.abs(xc - cm[c:c + 1, :]),
                                        axis=0, keepdims=True)
        res_patch = res_sum * (1.0 / K)                                  # [1, PT]

        # weight_mat = converter(coef_sod*sod + coef_res*res) + coef_avg
        weight = COEF_SOD * sod_patch + COEF_RES * res_patch + COEF_AVG  # [1, PT]
        prod_rows.append(weight * score)
        w_rows.append(weight)

    prod_all = jnp.concatenate(prod_rows, axis=0) if Bt > 1 else prod_rows[0]  # [Bt, PT]
    w_all = jnp.concatenate(w_rows, axis=0) if Bt > 1 else w_rows[0]           # [Bt, PT]

    # Mask patches past P (partial final lane tile).
    pidx = t * PT + jax.lax.broadcasted_iota(jnp.int32, (1, PT), 1)
    valid = pidx < P
    acc_p_ref[...] += jnp.where(valid, prod_all, 0.0)
    acc_w_ref[...] += jnp.where(valid, w_all, 0.0)

    @pl.when(t == pl.num_programs(1) - 1)
    def _finalize():
        sum_p = jnp.sum(acc_p_ref[...], axis=1, keepdims=True)           # [Bt, 1]
        if NORM_TYPE == "mean":
            out = sum_p * (1.0 / P)
        elif NORM_TYPE == "set_sum_1":
            out = sum_p / jnp.sum(acc_w_ref[...], axis=1, keepdims=True)
        else:
            raise NotImplementedError(f"Cannot recognize norm_type: {NORM_TYPE}")
        o_ref[...] = jnp.broadcast_to(out, o_ref.shape).astype(o_ref.dtype)


# ---------------------------------------------------------------------------
# Plain-JAX glue
# ---------------------------------------------------------------------------
def patchify_t(x):
    """NCHW [B,C,H,W] -> [B, K, P]; K=C*16 flattened as (c,i,j), P=(H/4)*(W/4) on lanes."""
    B, C, H, W = x.shape
    Hs, Ws = H // PATCH, W // PATCH
    xr = x.reshape(B, C, Hs, PATCH, Ws, PATCH)
    xr = xr.transpose(0, 1, 3, 5, 2, 4)              # [B, C, i, j, Hs, Ws]
    return xr.reshape(B, C * PATCH * PATCH, Hs * Ws)


def patchify_pk(x):
    """NCHW [B,C,H,W] -> [B, P, K] (reference layout, same (c,i,j) K ordering)."""
    B, C, H, W = x.shape
    Hs, Ws = H // PATCH, W // PATCH
    xr = x.reshape(B, C, Hs, PATCH, Ws, PATCH)
    xr = xr.transpose(0, 2, 4, 1, 3, 5)              # [B, Hs, Ws, C, i, j]
    return xr.reshape(B, Hs * Ws, C * PATCH * PATCH)


def init_params(key, C):
    K = C * PATCH * PATCH
    k1, k2, k3, k4, k5, k6 = jax.random.split(key, 6)
    return dict(
        w1=jax.random.normal(k1, (K, HIDDEN), jnp.float32) / np.sqrt(K),
        b1=jax.random.normal(k2, (1, HIDDEN), jnp.float32) * 0.1,
        w2=jax.random.normal(k3, (HIDDEN, 1), jnp.float32) / np.sqrt(HIDDEN),
        b2=jax.random.normal(k4, (1, 1), jnp.float32) * 0.1,
        w_sod_vec=jax.random.normal(k5, (C,), jnp.float32) / np.sqrt(C),
        b_sod=jax.random.normal(k6, (), jnp.float32) * 0.1,
    )


def build_combined_weight(params, C):
    """Concatenate w1^T, SOD-conv^T and patch-channel-mean^T into one [NC, K] weight."""
    PP = PATCH * PATCH
    w1_t = params["w1"].T                                                 # [H, K]
    # SOD 1x1 conv expanded per pixel slot:  wsod_t[q, c*16+q] = w_sod_vec[c]
    wsod_t = jnp.kron(params["w_sod_vec"][None, :],
                      jnp.eye(PP, dtype=jnp.float32))                     # [PP, K]
    # per-patch per-channel mean:            m_mean_t[c, c*16+q] = 1/16
    m_mean_t = jnp.kron(jnp.eye(C, dtype=jnp.float32),
                        jnp.ones((1, PP), jnp.float32) / PP)              # [C, K]
    return jnp.concatenate([w1_t, wsod_t, m_mean_t], axis=0)              # [NC, K]


@functools.partial(jax.jit, static_argnames=("compute_dtype",))
def forward_pallas(x, params, compute_dtype=jnp.float32):
    B, C, H, W = x.shape
    assert H % PATCH == 0 and W % PATCH == 0
    Hs, Ws = H // PATCH, W // PATCH
    P = Hs * Ws
    PP = PATCH * PATCH
    K = C * PP
    NC = HIDDEN + PP + C

    # Patch tile on lanes: biggest tile that keeps the double-buffered xp block tiny
    # compared with scoped VMEM on every generation (incl. v7x 64 MiB / TC).
    PT = P if P <= PT_MAX else PT_MAX
    NPT = pl.cdiv(P, PT)
    # Amortize the ~0.35us/step overhead by collapsing a small batch into one step.
    # NOTE: on v7x keep >= 2 grid steps (Bt=1) if you want both TensorCores busy.
    Bt = B if (NPT == 1 and B * P <= 4096) else 1

    xp = patchify_t(x.astype(jnp.float32)).astype(compute_dtype)          # [B, K, P]
    w_comb = build_combined_weight(params, C).astype(compute_dtype)       # [NC, K]
    b1_col = params["b1"].reshape(HIDDEN, 1)
    w2_col = params["w2"].reshape(HIDDEN, 1)
    b2 = params["b2"].reshape(1, 1)
    bsod = params["b_sod"].reshape(1, 1)

    kernel = functools.partial(_fused_predictor_kernel, C=C, P=P, PT=PT, Bt=Bt)

    def const_spec(shape):
        return pl.BlockSpec(shape, lambda b, t: (0, 0))

    out = pl.pallas_call(
        kernel,
        out_shape=jax.ShapeDtypeStruct((B, 128), jnp.float32),
        grid=(B // Bt, NPT),
        in_specs=[
            pl.BlockSpec((Bt, K, PT), lambda b, t: (b, 0, t)),   # x patches (P on lanes)
            const_spec((NC, K)),                                 # fused weight
            const_spec((HIDDEN, 1)),                             # D conv1 bias
            const_spec((HIDDEN, 1)),                             # D conv2 weight (VPU)
            const_spec((1, 1)),                                  # D conv2 bias
            const_spec((1, 1)),                                  # SOD bias
        ],
        out_specs=pl.BlockSpec((Bt, 128), lambda b, t: (b, 0)),
        scratch_shapes=[pltpu.VMEM((Bt, PT), jnp.float32),       # sum(weight*score)
                        pltpu.VMEM((Bt, PT), jnp.float32)],      # sum(weight)
        compiler_params=pltpu.CompilerParams(
            dimension_semantics=("parallel", "arbitrary")),
    )(xp, w_comb, b1_col, w2_col, b2, bsod)

    return out[:, 0]                                             # [B]


# ---------------------------------------------------------------------------
# Pure-JAX reference (mirrors the PyTorch forward with the synthetic submodules)
# ---------------------------------------------------------------------------
def reference_forward(x, params):
    B, C, H, W = x.shape
    Hs, Ws = H // PATCH, W // PATCH

    # D(x, patch_result=True, shape='mat4d') -> [B,1,Hs,Ws]
    xp = patchify_pk(x)
    h1 = jnp.einsum("bpk,kc->bpc", xp, params["w1"], precision="highest") + params["b1"]
    h1 = jnp.where(h1 >= 0, h1, 0.2 * h1)
    score = jnp.einsum("bpc,co->bpo", h1, params["w2"], precision="highest") + params["b2"]
    score_mat = score.reshape(B, Hs, Ws)

    # wmp_sod(x) -> [B,1,H,W]
    sod = jax.nn.sigmoid(jnp.einsum("bchw,c->bhw", x, params["w_sod_vec"],
                                    precision="highest") + params["b_sod"])

    # wmp_res(x) -> [B,1,H,W]
    xb = x.reshape(B, C, Hs, PATCH, Ws, PATCH)
    blur = xb.mean(axis=(3, 5), keepdims=True)
    res = jnp.abs(xb - blur).mean(axis=1).reshape(B, H, W)

    # weight_map, converter (adaptive avg pool), + coef_avg
    wmap = COEF_SOD * sod + COEF_RES * res
    wmat = wmap.reshape(B, Hs, PATCH, Ws, PATCH).mean(axis=(2, 4)) + COEF_AVG

    prod = wmat * score_mat
    if NORM_TYPE == "mean":
        return prod.mean(axis=(1, 2))
    elif NORM_TYPE == "set_sum_1":
        return prod.sum(axis=(1, 2)) / wmat.sum(axis=(1, 2))
    else:
        raise NotImplementedError(NORM_TYPE)


if __name__ == "__main__":
    key = jax.random.PRNGKey(0)
    kx, kp = jax.random.split(key)

    B, C, H, W = 2, 4, 16, 16
    x = jax.random.normal(kx, (B, C, H, W), jnp.float32)     # NCHW like PyTorch
    params = init_params(kp, C)

    ref = reference_forward(x, params)

    # f32 path: tight check against the f32 reference.
    out_f32 = jax.block_until_ready(forward_pallas(x, params, compute_dtype=jnp.float32))
    np.testing.assert_allclose(np.asarray(out_f32), np.asarray(ref),
                               rtol=2e-3, atol=2e-4)

    # bf16 input path (memory-bound optimization for v5e/v6e): f32 MXU accumulation,
    # f32 VPU epilogue; looser tolerance since inputs/weights are quantized to bf16.
    out_bf16 = jax.block_until_ready(forward_pallas(x, params, compute_dtype=jnp.bfloat16))
    np.testing.assert_allclose(np.asarray(out_bf16), np.asarray(ref),
                               rtol=5e-2, atol=2e-2)

    print("KERNEL_OK")
</pallas_src>

<mosaic_0001>
module attributes {stable_mosaic.version = 11 : i64} {
  func.func @_fused_predictor_kernel(%arg0: i32, %arg1: i32, %arg2: memref<2x64x16xf32, #tpu.memory_space<vmem>>, %arg3: memref<28x64xf32, #tpu.memory_space<vmem>>, %arg4: memref<8x1xf32, #tpu.memory_space<vmem>>, %arg5: memref<8x1xf32, #tpu.memory_space<vmem>>, %arg6: memref<1x1xf32, #tpu.memory_space<vmem>>, %arg7: memref<1x1xf32, #tpu.memory_space<vmem>>, %arg8: memref<2x128xf32, #tpu.memory_space<vmem>>, %arg9: memref<2x16xf32, #tpu.memory_space<vmem>>, %arg10: memref<2x16xf32, #tpu.memory_space<vmem>>) attributes {dimension_semantics = [#tpu.dimension_semantics<parallel>, #tpu.dimension_semantics<arbitrary>], iteration_bounds = array<i64: 1, 1>, scalar_prefetch = 0 : i64, scratch_operands = 2 : i64, tpu.core_type = #tpu.core_type<tc>, window_params = [{transform_indices = @transform_0, window_bounds = array<i64: 2, 64, 16>}, {pipeline_mode = #tpu.pipeline_mode<synchronous>, transform_indices = @transform_1, window_bounds = array<i64: 28, 64>}, {pipeline_mode = #tpu.pipeline_mode<synchronous>, transform_indices = @transform_2, window_bounds = array<i64: 8, 1>}, {pipeline_mode = #tpu.pipeline_mode<synchronous>, transform_indices = @transform_3, window_bounds = array<i64: 8, 1>}, {pipeline_mode = #tpu.pipeline_mode<synchronous>, transform_indices = @transform_4, window_bounds = array<i64: 1, 1>}, {pipeline_mode = #tpu.pipeline_mode<synchronous>, transform_indices = @transform_5, window_bounds = array<i64: 1, 1>}, {transform_indices = @transform_6, window_bounds = array<i64: 2, 128>}]} {
    %c0_i32 = arith.constant 0 : i32
    %0 = arith.cmpi eq, %arg1, %c0_i32 : i32
    %1 = arith.extui %0 : i1 to i32
    %c0_i32_0 = arith.constant 0 : i32
    %2 = arith.cmpi ne, %1, %c0_i32_0 : i32
    scf.if %2 {
      %cst_63 = arith.constant 0.000000e+00 : f32
      %181 = vector.broadcast %cst_63 : f32 to vector<2x16xf32>
      %c0_64 = arith.constant 0 : index
      %c0_65 = arith.constant 0 : index
      %182 = vector.load %arg9[%c0_64, %c0_65] : memref<2x16xf32, #tpu.memory_space<vmem>>, vector<2x16xf32>
      tpu.vector_store %arg9[%c0_64, %c0_65], %181 {strides = array<i32>} : memref<2x16xf32, #tpu.memory_space<vmem>>, vector<2x16xf32>,
      %cst_66 = arith.constant 0.000000e+00 : f32
      %183 = vector.broadcast %cst_66 : f32 to vector<2x16xf32>
      %c0_67 = arith.constant 0 : index
      %c0_68 = arith.constant 0 : index
      %184 = vector.load %arg10[%c0_67, %c0_68] : memref<2x16xf32, #tpu.memory_space<vmem>>, vector<2x16xf32>
      tpu.vector_store %arg10[%c0_67, %c0_68], %183 {strides = array<i32>} : memref<2x16xf32, #tpu.memory_space<vmem>>, vector<2x16xf32>,
    } else {
    }
    %c0 = arith.constant 0 : index
    %c0_1 = arith.constant 0 : index
    %3 = vector.load %arg3[%c0, %c0_1] : memref<28x64xf32, #tpu.memory_space<vmem>>, vector<28x64xf32>
    %c0_2 = arith.constant 0 : index
    %c0_3 = arith.constant 0 : index
    %4 = vector.load %arg4[%c0_2, %c0_3] : memref<8x1xf32, #tpu.memory_space<vmem>>, vector<8x1xf32>
    %c0_4 = arith.constant 0 : index
    %c0_5 = arith.constant 0 : index
    %5 = vector.load %arg5[%c0_4, %c0_5] : memref<8x1xf32, #tpu.memory_space<vmem>>, vector<8x1xf32>
    %c0_6 = arith.constant 0 : index
    %c0_7 = arith.constant 0 : index
    %c0_8 = arith.constant 0 : index
    %6 = vector.load %arg2[%c0_6, %c0_7, %c0_8] : memref<2x64x16xf32, #tpu.memory_space<vmem>>, vector<1x64x16xf32>
    %7 = vector.shape_cast %6 : vector<1x64x16xf32> to vector<64x16xf32>
    %cst = arith.constant dense<0.000000e+00> : vector<28x16xf32>
    %8 = tpu.matmul %3, %7, %cst {dimension_numbers = #tpu.dot_dimension_numbers<[1], [0], [0], [1], [0, 0, 1, 1], [], []>} : vector<28x64xf32>, vector<64x16xf32>, vector<28x16xf32> -> vector<28x16xf32>
    %9 = vector.extract_strided_slice %8 {offsets = [0, 0], sizes = [8, 16], strides = [1, 1]} : vector<28x16xf32> to vector<8x16xf32>
    %10 = vector.broadcast %4 : vector<8x1xf32> to vector<8x16xf32>
    %11 = arith.addf %9, %10 : vector<8x16xf32>
    %cst_9 = arith.constant 0.000000e+00 : f32
    %12 = vector.broadcast %cst_9 : f32 to vector<8x16xf32>
    %13 = arith.cmpf oge, %11, %12 : vector<8x16xf32>
    %cst_10 = arith.constant 2.000000e-01 : f32
    %14 = vector.broadcast %cst_10 : f32 to vector<8x16xf32>
    %15 = arith.mulf %14, %11 : vector<8x16xf32>
    %16 = arith.select %13, %11, %15 : vector<8x16xi1>, vector<8x16xf32>
    %17 = vector.broadcast %5 : vector<8x1xf32> to vector<8x16xf32>
    %18 = arith.mulf %16, %17 : vector<8x16xf32>
    %cst_11 = arith.constant dense<0.000000e+00> : vector<16xf32>
    %19 = vector.multi_reduction <add>, %18, %cst_11 [0] : vector<8x16xf32> to vector<16xf32>
    %20 = vector.shape_cast %19 : vector<16xf32> to vector<1x16xf32>
    %c0_12 = arith.constant 0 : index
    %c0_13 = arith.constant 0 : index
    %21 = vector.load %arg6[%c0_12, %c0_13] : memref<1x1xf32, #tpu.memory_space<vmem>>, vector<1x1xf32>
    %22 = vector.broadcast %21 : vector<1x1xf32> to vector<1x16xf32>
    %23 = arith.addf %20, %22 : vector<1x16xf32>
    %24 = vector.extract_strided_slice %8 {offsets = [8, 0], sizes = [16, 16], strides = [1, 1]} : vector<28x16xf32> to vector<16x16xf32>
    %c0_14 = arith.constant 0 : index
    %c0_15 = arith.constant 0 : index
    %25 = vector.load %arg7[%c0_14, %c0_15] : memref<1x1xf32, #tpu.memory_space<vmem>>, vector<1x1xf32>
    %26 = vector.broadcast %25 : vector<1x1xf32> to vector<16x16xf32>
    %27 = arith.addf %24, %26 : vector<16x16xf32>
    %28 = arith.negf %27 : vector<16x16xf32>
    %29 = math.exp %28 : vector<16x16xf32>
    %cst_16 = arith.constant 1.000000e+00 : f32
    %30 = vector.broadcast %cst_16 : f32 to vector<16x16xf32>
    %31 = arith.addf %30, %29 : vector<16x16xf32>
    %32 = arith.divf %30, %31 : vector<16x16xf32>
    %cst_17 = arith.constant dense<0.000000e+00> : vector<16xf32>
    %33 = vector.multi_reduction <add>, %32, %cst_17 [0] : vector<16x16xf32> to vector<16xf32>
    %34 = vector.shape_cast %33 : vector<16xf32> to vector<1x16xf32>
    %cst_18 = arith.constant 1.600000e+01 : f32
    %35 = vector.broadcast %cst_18 : f32 to vector<1x16xf32>
    %36 = arith.divf %34, %35 : vector<1x16xf32>
    %37 = vector.extract_strided_slice %8 {offsets = [24, 0], sizes = [4, 16], strides = [1, 1]} : vector<28x16xf32> to vector<4x16xf32>
    %cst_19 = arith.constant 0.000000e+00 : f32
    %38 = vector.broadcast %cst_19 : f32 to vector<1x16xf32>
    %39 = vector.extract_strided_slice %7 {offsets = [0, 0], sizes = [16, 16], strides = [1, 1]} : vector<64x16xf32> to vector<16x16xf32>
    %40 = vector.extract_strided_slice %37 {offsets = [0, 0], sizes = [1, 16], strides = [1, 1]} : vector<4x16xf32> to vector<1x16xf32>
    %41 = vector.broadcast %40 : vector<1x16xf32> to vector<16x16xf32>
    %42 = arith.subf %39, %41 : vector<16x16xf32>
    %43 = math.absf %42 : vector<16x16xf32>
    %cst_20 = arith.constant dense<0.000000e+00> : vector<16xf32>
    %44 = vector.multi_reduction <add>, %43, %cst_20 [0] : vector<16x16xf32> to vector<16xf32>
    %45 = vector.shape_cast %44 : vector<16xf32> to vector<1x16xf32>
    %46 = arith.addf %38, %45 : vector<1x16xf32>
    %47 = vector.extract_strided_slice %7 {offsets = [16, 0], sizes = [16, 16], strides = [1, 1]} : vector<64x16xf32> to vector<16x16xf32>
    %48 = vector.extract_strided_slice %37 {offsets = [1, 0], sizes = [1, 16], strides = [1, 1]} : vector<4x16xf32> to vector<1x16xf32>
    %49 = vector.broadcast %48 : vector<1x16xf32> to vector<16x16xf32>
    %50 = arith.subf %47, %49 : vector<16x16xf32>
    %51 = math.absf %50 : vector<16x16xf32>
    %cst_21 = arith.constant dense<0.000000e+00> : vector<16xf32>
    %52 = vector.multi_reduction <add>, %51, %cst_21 [0] : vector<16x16xf32> to vector<16xf32>
    %53 = vector.shape_cast %52 : vector<16xf32> to vector<1x16xf32>
    %54 = arith.addf %46, %53 : vector<1x16xf32>
    %55 = vector.extract_strided_slice %7 {offsets = [32, 0], sizes = [16, 16], strides = [1, 1]} : vector<64x16xf32> to vector<16x16xf32>
    %56 = vector.extract_strided_slice %37 {offsets = [2, 0], sizes = [1, 16], strides = [1, 1]} : vector<4x16xf32> to vector<1x16xf32>
    %57 = vector.broadcast %56 : vector<1x16xf32> to vector<16x16xf32>
    %58 = arith.subf %55, %57 : vector<16x16xf32>
    %59 = math.absf %58 : vector<16x16xf32>
    %cst_22 = arith.constant dense<0.000000e+00> : vector<16xf32>
    %60 = vector.multi_reduction <add>, %59, %cst_22 [0] : vector<16x16xf32> to vector<16xf32>
    %61 = vector.shape_cast %60 : vector<16xf32> to vector<1x16xf32>
    %62 = arith.addf %54, %61 : vector<1x16xf32>
    %63 = vector.extract_strided_slice %7 {offsets = [48, 0], sizes = [16, 16], strides = [1, 1]} : vector<64x16xf32> to vector<16x16xf32>
    %64 = vector.extract_strided_slice %37 {offsets = [3, 0], sizes = [1, 16], strides = [1, 1]} : vector<4x16xf32> to vector<1x16xf32>
    %65 = vector.broadcast %64 : vector<1x16xf32> to vector<16x16xf32>
    %66 = arith.subf %63, %65 : vector<16x16xf32>
    %67 = math.absf %66 : vector<16x16xf32>
    %cst_23 = arith.constant dense<0.000000e+00> : vector<16xf32>
    %68 = vector.multi_reduction <add>, %67, %cst_23 [0] : vector<16x16xf32> to vector<16xf32>
    %69 = vector.shape_cast %68 : vector<16xf32> to vector<1x16xf32>
    %70 = arith.addf %62, %69 : vector<1x16xf32>
    %cst_24 = arith.constant 1.562500e-02 : f32
    %71 = vector.broadcast %cst_24 : f32 to vector<1x16xf32>
    %72 = arith.mulf %70, %71 : vector<1x16xf32>
    %cst_25 = arith.constant 5.000000e-01 : f32
    %73 = vector.broadcast %cst_25 : f32 to vector<1x16xf32>
    %74 = arith.mulf %73, %36 : vector<1x16xf32>
    %cst_26 = arith.constant 3.000000e-01 : f32
    %75 = vector.broadcast %cst_26 : f32 to vector<1x16xf32>
    %76 = arith.mulf %75, %72 : vector<1x16xf32>
    %77 = arith.addf %74, %76 : vector<1x16xf32>
    %cst_27 = arith.constant 1.000000e+00 : f32
    %78 = vector.broadcast %cst_27 : f32 to vector<1x16xf32>
    %79 = arith.addf %77, %78 : vector<1x16xf32>
    %80 = arith.mulf %79, %23 : vector<1x16xf32>
    %c1 = arith.constant 1 : index
    %c0_28 = arith.constant 0 : index
    %c0_29 = arith.constant 0 : index
    %81 = vector.load %arg2[%c1, %c0_28, %c0_29] : memref<2x64x16xf32, #tpu.memory_space<vmem>>, vector<1x64x16xf32>
    %82 = vector.shape_cast %81 : vector<1x64x16xf32> to vector<64x16xf32>
    %cst_30 = arith.constant dense<0.000000e+00> : vector<28x16xf32>
    %83 = tpu.matmul %3, %82, %cst_30 {dimension_numbers = #tpu.dot_dimension_numbers<[1], [0], [0], [1], [0, 0, 1, 1], [], []>} : vector<28x64xf32>, vector<64x16xf32>, vector<28x16xf32> -> vector<28x16xf32>
    %84 = vector.extract_strided_slice %83 {offsets = [0, 0], sizes = [8, 16], strides = [1, 1]} : vector<28x16xf32> to vector<8x16xf32>
    %85 = vector.broadcast %4 : vector<8x1xf32> to vector<8x16xf32>
    %86 = arith.addf %84, %85 : vector<8x16xf32>
    %cst_31 = arith.constant 0.000000e+00 : f32
    %87 = vector.broadcast %cst_31 : f32 to vector<8x16xf32>
    %88 = arith.cmpf oge, %86, %87 : vector<8x16xf32>
    %cst_32 = arith.constant 2.000000e-01 : f32
    %89 = vector.broadcast %cst_32 : f32 to vector<8x16xf32>
    %90 = arith.mulf %89, %86 : vector<8x16xf32>
    %91 = arith.select %88, %86, %90 : vector<8x16xi1>, vector<8x16xf32>
    %92 = vector.broadcast %5 : vector<8x1xf32> to vector<8x16xf32>
    %93 = arith.mulf %91, %92 : vector<8x16xf32>
    %cst_33 = arith.constant dense<0.000000e+00> : vector<16xf32>
    %94 = vector.multi_reduction <add>, %93, %cst_33 [0] : vector<8x16xf32> to vector<16xf32>
    %95 = vector.shape_cast %94 : vector<16xf32> to vector<1x16xf32>
    %c0_34 = arith.constant 0 : index
    %c0_35 = arith.constant 0 : index
    %96 = vector.load %arg6[%c0_34, %c0_35] : memref<1x1xf32, #tpu.memory_space<vmem>>, vector<1x1xf32>
    %97 = vector.broadcast %96 : vector<1x1xf32> to vector<1x16xf32>
    %98 = arith.addf %95, %97 : vector<1x16xf32>
    %99 = vector.extract_strided_slice %83 {offsets = [8, 0], sizes = [16, 16], strides = [1, 1]} : vector<28x16xf32> to vector<16x16xf32>
    %c0_36 = arith.constant 0 : index
    %c0_37 = arith.constant 0 : index
    %100 = vector.load %arg7[%c0_36, %c0_37] : memref<1x1xf32, #tpu.memory_space<vmem>>, vector<1x1xf32>
    %101 = vector.broadcast %100 : vector<1x1xf32> to vector<16x16xf32>
    %102 = arith.addf %99, %101 : vector<16x16xf32>
    %103 = arith.negf %102 : vector<16x16xf32>
    %104 = math.exp %103 : vector<16x16xf32>
    %cst_38 = arith.constant 1.000000e+00 : f32
    %105 = vector.broadcast %cst_38 : f32 to vector<16x16xf32>
    %106 = arith.addf %105, %104 : vector<16x16xf32>
    %107 = arith.divf %105, %106 : vector<16x16xf32>
    %cst_39 = arith.constant dense<0.000000e+00> : vector<16xf32>
    %108 = vector.multi_reduction <add>, %107, %cst_39 [0] : vector<16x16xf32> to vector<16xf32>
    %109 = vector.shape_cast %108 : vector<16xf32> to vector<1x16xf32>
    %cst_40 = arith.constant 1.600000e+01 : f32
    %110 = vector.broadcast %cst_40 : f32 to vector<1x16xf32>
    %111 = arith.divf %109, %110 : vector<1x16xf32>
    %112 = vector.extract_strided_slice %83 {offsets = [24, 0], sizes = [4, 16], strides = [1, 1]} : vector<28x16xf32> to vector<4x16xf32>
    %cst_41 = arith.constant 0.000000e+00 : f32
    %113 = vector.broadcast %cst_41 : f32 to vector<1x16xf32>
    %114 = vector.extract_strided_slice %82 {offsets = [0, 0], sizes = [16, 16], strides = [1, 1]} : vector<64x16xf32> to vector<16x16xf32>
    %115 = vector.extract_strided_slice %112 {offsets = [0, 0], sizes = [1, 16], strides = [1, 1]} : vector<4x16xf32> to vector<1x16xf32>
    %116 = vector.broadcast %115 : vector<1x16xf32> to vector<16x16xf32>
    %117 = arith.subf %114, %116 : vector<16x16xf32>
    %118 = math.absf %117 : vector<16x16xf32>
    %cst_42 = arith.constant dense<0.000000e+00> : vector<16xf32>
    %119 = vector.multi_reduction <add>, %118, %cst_42 [0] : vector<16x16xf32> to vector<16xf32>
    %120 = vector.shape_cast %119 : vector<16xf32> to vector<1x16xf32>
    %121 = arith.addf %113, %120 : vector<1x16xf32>
    %122 = vector.extract_strided_slice %82 {offsets = [16, 0], sizes = [16, 16], strides = [1, 1]} : vector<64x16xf32> to vector<16x16xf32>
    %123 = vector.extract_strided_slice %112 {offsets = [1, 0], sizes = [1, 16], strides = [1, 1]} : vector<4x16xf32> to vector<1x16xf32>
    %124 = vector.broadcast %123 : vector<1x16xf32> to vector<16x16xf32>
    %125 = arith.subf %122, %124 : vector<16x16xf32>
    %126 = math.absf %125 : vector<16x16xf32>
    %cst_43 = arith.constant dense<0.000000e+00> : vector<16xf32>
    %127 = vector.multi_reduction <add>, %126, %cst_43 [0] : vector<16x16xf32> to vector<16xf32>
    %128 = vector.shape_cast %127 : vector<16xf32> to vector<1x16xf32>
    %129 = arith.addf %121, %128 : vector<1x16xf32>
    %130 = vector.extract_strided_slice %82 {offsets = [32, 0], sizes = [16, 16], strides = [1, 1]} : vector<64x16xf32> to vector<16x16xf32>
    %131 = vector.extract_strided_slice %112 {offsets = [2, 0], sizes = [1, 16], strides = [1, 1]} : vector<4x16xf32> to vector<1x16xf32>
    %132 = vector.broadcast %131 : vector<1x16xf32> to vector<16x16xf32>
    %133 = arith.subf %130, %132 : vector<16x16xf32>
    %134 = math.absf %133 : vector<16x16xf32>
    %cst_44 = arith.constant dense<0.000000e+00> : vector<16xf32>
    %135 = vector.multi_reduction <add>, %134, %cst_44 [0] : vector<16x16xf32> to vector<16xf32>
    %136 = vector.shape_cast %135 : vector<16xf32> to vector<1x16xf32>
    %137 = arith.addf %129, %136 : vector<1x16xf32>
    %138 = vector.extract_strided_slice %82 {offsets = [48, 0], sizes = [16, 16], strides = [1, 1]} : vector<64x16xf32> to vector<16x16xf32>
    %139 = vector.extract_strided_slice %112 {offsets = [3, 0], sizes = [1, 16], strides = [1, 1]} : vector<4x16xf32> to vector<1x16xf32>
    %140 = vector.broadcast %139 : vector<1x16xf32> to vector<16x16xf32>
    %141 = arith.subf %138, %140 : vector<16x16xf32>
    %142 = math.absf %141 : vector<16x16xf32>
    %cst_45 = arith.constant dense<0.000000e+00> : vector<16xf32>
    %143 = vector.multi_reduction <add>, %142, %cst_45 [0] : vector<16x16xf32> to vector<16xf32>
    %144 = vector.shape_cast %143 : vector<16xf32> to vector<1x16xf32>
    %145 = arith.addf %137, %144 : vector<1x16xf32>
    %cst_46 = arith.constant 1.562500e-02 : f32
    %146 = vector.broadcast %cst_46 : f32 to vector<1x16xf32>
    %147 = arith.mulf %145, %146 : vector<1x16xf32>
    %cst_47 = arith.constant 5.000000e-01 : f32
    %148 = vector.broadcast %cst_47 : f32 to vector<1x16xf32>
    %149 = arith.mulf %148, %111 : vector<1x16xf32>
    %cst_48 = arith.constant 3.000000e-01 : f32
    %150 = vector.broadcast %cst_48 : f32 to vector<1x16xf32>
    %151 = arith.mulf %150, %147 : vector<1x16xf32>
    %152 = arith.addf %149, %151 : vector<1x16xf32>
    %cst_49 = arith.constant 1.000000e+00 : f32
    %153 = vector.broadcast %cst_49 : f32 to vector<1x16xf32>
    %154 = arith.addf %152, %153 : vector<1x16xf32>
    %155 = arith.mulf %154, %98 : vector<1x16xf32>
    %156 = tpu.concatenate %80, %155 in 0 : vector<1x16xf32>, vector<1x16xf32> -> vector<2x16xf32>
    %157 = tpu.concatenate %79, %154 in 0 : vector<1x16xf32>, vector<1x16xf32> -> vector<2x16xf32>
    %c16_i32 = arith.constant 16 : i32
    %158 = arith.muli %arg1, %c16_i32 : i32
    %159 = tpu.iota {dimensions = array<i32: 1>} : vector<1x16xi32>
    %160 = vector.broadcast %158 : i32 to vector<1x16xi32>
    %161 = arith.addi %160, %159 : vector<1x16xi32>
    %c16_i32_50 = arith.constant 16 : i32
    %162 = vector.broadcast %c16_i32_50 : i32 to vector<1x16xi32>
    %163 = arith.cmpi slt, %161, %162 : vector<1x16xi32>
    %c0_51 = arith.constant 0 : index
    %c0_52 = arith.constant 0 : index
    %164 = vector.load %arg9[%c0_51, %c0_52] : memref<2x16xf32, #tpu.memory_space<vmem>>, vector<2x16xf32>
    %cst_53 = arith.constant 0.000000e+00 : f32
    %165 = vector.shape_cast %163 : vector<1x16xi1> to vector<1x16xi1>
    %166 = vector.broadcast %165 : vector<1x16xi1> to vector<2x16xi1>
    %167 = vector.broadcast %cst_53 : f32 to vector<2x16xf32>
    %168 = arith.select %166, %156, %167 : vector<2x16xi1>, vector<2x16xf32>
    %169 = arith.addf %164, %168 : vector<2x16xf32>
    %c0_54 = arith.constant 0 : index
    %c0_55 = arith.constant 0 : index
    %170 = vector.load %arg9[%c0_54, %c0_55] : memref<2x16xf32, #tpu.memory_space<vmem>>, vector<2x16xf32>
    tpu.vector_store %arg9[%c0_54, %c0_55], %169 {strides = array<i32>} : memref<2x16xf32, #tpu.memory_space<vmem>>, vector<2x16xf32>,
    %c0_56 = arith.constant 0 : index
    %c0_57 = arith.constant 0 : index
    %171 = vector.load %arg10[%c0_56, %c0_57] : memref<2x16xf32, #tpu.memory_space<vmem>>, vector<2x16xf32>
    %cst_58 = arith.constant 0.000000e+00 : f32
    %172 = vector.shape_cast %163 : vector<1x16xi1> to vector<1x16xi1>
    %173 = vector.broadcast %172 : vector<1x16xi1> to vector<2x16xi1>
    %174 = vector.broadcast %cst_58 : f32 to vector<2x16xf32>
    %175 = arith.select %173, %157, %174 : vector<2x16xi1>, vector<2x16xf32>
    %176 = arith.addf %171, %175 : vector<2x16xf32>
    %c0_59 = arith.constant 0 : index
    %c0_60 = arith.constant 0 : index
    %177 = vector.load %arg10[%c0_59, %c0_60] : memref<2x16xf32, #tpu.memory_space<vmem>>, vector<2x16xf32>
    tpu.vector_store %arg10[%c0_59, %c0_60], %176 {strides = array<i32>} : memref<2x16xf32, #tpu.memory_space<vmem>>, vector<2x16xf32>,
    %c0_i32_61 = arith.constant 0 : i32
    %178 = arith.cmpi eq, %arg1, %c0_i32_61 : i32
    %179 = arith.extui %178 : i1 to i32
    %c0_i32_62 = arith.constant 0 : i32
    %180 = arith.cmpi ne, %179, %c0_i32_62 : i32
    scf.if %180 {
      %c0_63 = arith.constant 0 : index
      %c0_64 = arith.constant 0 : index
      %181 = vector.load %arg9[%c0_63, %c0_64] : memref<2x16xf32, #tpu.memory_space<vmem>>, vector<2x16xf32>
      %cst_65 = arith.constant dense<0.000000e+00> : vector<2xf32>
      %182 = vector.multi_reduction <add>, %181, %cst_65 [1] : vector<2x16xf32> to vector<2xf32>
      %183 = vector.shape_cast %182 : vector<2xf32> to vector<2x1xf32>
      %cst_66 = arith.constant 6.250000e-02 : f32
      %184 = vector.broadcast %cst_66 : f32 to vector<2x1xf32>
      %185 = arith.mulf %183, %184 : vector<2x1xf32>
      %186 = vector.shape_cast %185 : vector<2x1xf32> to vector<2x1xf32>
      %187 = vector.broadcast %186 : vector<2x1xf32> to vector<2x128xf32>
      %c0_67 = arith.constant 0 : index
      %c0_68 = arith.constant 0 : index
      %188 = vector.load %arg8[%c0_67, %c0_68] : memref<2x128xf32, #tpu.memory_space<vmem>>, vector<2x128xf32>
      tpu.vector_store %arg8[%c0_67, %c0_68], %187 {strides = array<i32>} : memref<2x128xf32, #tpu.memory_space<vmem>>, vector<2x128xf32>,
    } else {
    }
    return
  }
  func.func @transform_0(%arg0: i32, %arg1: i32) -> (i32, i32, i32) {
    %c0_i32 = arith.constant 0 : i32
    %c0_i32_0 = arith.constant 0 : i32
    return %arg0, %c0_i32, %arg1 : i32, i32, i32
  }
  func.func @transform_1(%arg0: i32, %arg1: i32) -> (i32, i32) {
    %c0_i32 = arith.constant 0 : i32
    %c0_i32_0 = arith.constant 0 : i32
    %c0_i32_1 = arith.constant 0 : i32
    return %c0_i32, %c0_i32_0 : i32, i32
  }
  func.func @transform_2(%arg0: i32, %arg1: i32) -> (i32, i32) {
    %c0_i32 = arith.constant 0 : i32
    %c0_i32_0 = arith.constant 0 : i32
    %c0_i32_1 = arith.constant 0 : i32
    return %c0_i32, %c0_i32_0 : i32, i32
  }
  func.func @transform_3(%arg0: i32, %arg1: i32) -> (i32, i32) {
    %c0_i32 = arith.constant 0 : i32
    %c0_i32_0 = arith.constant 0 : i32
    %c0_i32_1 = arith.constant 0 : i32
    return %c0_i32, %c0_i32_0 : i32, i32
  }
  func.func @transform_4(%arg0: i32, %arg1: i32) -> (i32, i32) {
    %c0_i32 = arith.constant 0 : i32
    %c0_i32_0 = arith.constant 0 : i32
    %c0_i32_1 = arith.constant 0 : i32
    return %c0_i32, %c0_i32_0 : i32, i32
  }
  func.func @transform_5(%arg0: i32, %arg1: i32) -> (i32, i32) {
    %c0_i32 = arith.constant 0 : i32
    %c0_i32_0 = arith.constant 0 : i32
    %c0_i32_1 = arith.constant 0 : i32
    return %c0_i32, %c0_i32_0 : i32, i32
  }
  func.func @transform_6(%arg0: i32, %arg1: i32) -> (i32, i32) {
    %c0_i32 = arith.constant 0 : i32
    %c0_i32_0 = arith.constant 0 : i32
    return %arg0, %c0_i32 : i32, i32
  }
}

</mosaic_0001>

<bundles_post_ra>
// kernel: forward_pallas.1
= control target key start
LH: loop header
LB: loop body
LE: loop exit
PB: predicated region body
PF: predicated region fallthrough
CT: control target
= control target key end

     0   :  { %v511_v3 = vmov 0   ;;  %vm48_vm0 = vcmask 523264   ;;  %vm105_vm3 = vcmask 130048   ;;  %s913_s0 = inlined_call_operand.vmem [shape: f32[2,64,16], index: 0, kind: input, shape index: {}]   ;;  %s914_s5 = inlined_call_operand.<no memory space> [shape: f32[1,1], index: 5, kind: input, shape index: {}]   ;;  %s915_s4 = inlined_call_operand.<no memory space> [shape: f32[1,1], index: 4, kind: input, shape index: {}]   ;;  %s916_s1 = inlined_call_operand.vmem [shape: f32[28,64], index: 1, kind: input, shape index: {}]   ;;  %s917_s3 = inlined_call_operand.vmem [shape: f32[8,1], index: 3, kind: input, shape index: {}]   ;;  %s918_s2 = inlined_call_operand.vmem [shape: f32[8,1], index: 2, kind: input, shape index: {}]   ;;  %s919_s6 = inlined_call_operand.vmem [shape: f32[2,128], index: 6, kind: output, shape index: {}]  }
   0x1   :  { %v552_v0 = vld [vmem:[%s913_s0 + $0x38] sm:$0xff]  ;;  %v562_v2 = vld [vmem:[%s913_s0 + $0x30] sm:$0xff]  ;;  %490 = vset.pattern.permute.xlu0 %v511_v3  ;;  %v13_v4 = vstv %s914_s5  ;;  %491 = vset.pattern.permute.xlu1 %v511_v3  ;;  %v11_v6 = vstv %s915_s4 }
   0x2   :  { %v557_v1 = vld [vmem:[%s913_s0 + $0x78] sm:$0xff]  ;;  %69 = vmatpush.msra.mxu0 %v552_v0  ;;  %471 = vmatpush.msra.mxu2 %v552_v0  ;;  %v572_v5 = vld [vmem:[%s913_s0 + $0x70] sm:$0xff]  ;;  %14 = vst [vmem:[#allocation5] sm:$0x1] %v13_v4  ;;  %v582_v7 = vld [vmem:[%s913_s0 + $0x28] sm:$0xff] }
   0x3   :  { %268 = vmatpush.msra.mxu1 %v557_v1  ;;  %479 = vmatpush.msra.mxu3 %v557_v1  ;;  %12 = vst [vmem:[#allocation4] sm:$0x1] %v11_v6  ;;  %v589_v8 = vld [vmem:[%s913_s0 + $0x68] sm:$0xff]  ;;  %v596_v9 = vld [vmem:[%s913_s0 + $0x20] sm:$0xff]  ;;  %v610_v11 = vld [vmem:[%s913_s0 + $0x18] sm:$0xff] }
   0x4   :  { %70 = vmatpush.msra.mxu0 %v562_v2  ;;  %472 = vmatpush.msra.mxu2 %v562_v2  ;;  %v603_v10 = vld [vmem:[%s913_s0 + $0x60] sm:$0xff]  ;;  %v617_v12 = vld [vmem:[%s913_s0 + $0x58] sm:$0xff]  ;;  %v624_v13 = vld [vmem:[%s913_s0 + $0x10] sm:$0xff] }
   0x5   :  { %269 = vmatpush.msra.mxu1 %v572_v5  ;;  %480 = vmatpush.msra.mxu3 %v572_v5  ;;  %v631_v14 = vld [vmem:[%s913_s0 + $0x50] sm:$0xff]  ;;  %v638_v15 = vld [vmem:[%s913_s0 + $0x8] sm:$0xff]  ;;  %v652_v17 = vld [vmem:[%s913_s0] sm:$0xff] }
   0x6   :  { %71 = vmatpush.msra.mxu0 %v582_v7  ;;  %473 = vmatpush.msra.mxu2 %v582_v7  ;;  %v645_v16 = vld [vmem:[%s913_s0 + $0x48] sm:$0xff]  ;;  %v659_v18 = vld [vmem:[%s913_s0 + $0x40] sm:$0xff]  ;;  %v36_v20 = vld [vmem:[%s916_s1 + $0x10] sm:$0xff] }
   0x7   :  { %270 = vmatpush.msra.mxu1 %v589_v8  ;;  %481 = vmatpush.msra.mxu3 %v589_v8  ;;  %v34_v19 = vld [vmem:[%s916_s1] sm:$0xff]  ;;  %v35_v23 = vld [vmem:[%s916_s1 + $0x8] sm:$0xff]  ;;  %v37_v24 = vld [vmem:[%s916_s1 + $0x18] sm:$0xf] }
   0x8   :  { %72 = vmatpush.msra.mxu0 %v596_v9  ;;  %474 = vmatpush.msra.mxu2 %v596_v9  ;;  %v39_v22 = vld [vmem:[%s917_s3] sm:$0xff] }
   0x9   :  { %271 = vmatpush.msra.mxu1 %v603_v10  ;;  %482 = vmatpush.msra.mxu3 %v603_v10  ;;  %v492_v21 = vld [vmem:[#allocation5] ss:$0 sm:$0xff] }
   0xa   :  { %73 = vmatpush.msra.mxu0 %v610_v11  ;;  %475 = vmatpush.msra.mxu2 %v610_v11  ;;  %v38_v25 = vld [vmem:[%s918_s2] sm:$0xff] }
   0xb   :  { %272 = vmatpush.msra.mxu1 %v617_v12  ;;  %483 = vmatpush.msra.mxu3 %v617_v12  ;;  %v113_v26 = vld [vmem:[#allocation4] sm:$0x1] }
   0xc   :  { %74 = vmatpush.msra.mxu0 %v624_v13  ;;  %476 = vmatpush.msra.mxu2 %v624_v13 }
   0xd   :  { %273 = vmatpush.msra.mxu1 %v631_v14  ;;  %484 = vmatpush.msra.mxu3 %v631_v14 }
   0xe   :  { %75 = vmatpush.msra.mxu0 %v638_v15  ;;  %477 = vmatpush.msra.mxu2 %v638_v15 }
   0xf   :  { %274 = vmatpush.msra.mxu1 %v645_v16  ;;  %485 = vmatpush.msra.mxu3 %v645_v16 }
  0x10   :  { %76 = vmatpush.msra.mxu0 %v652_v17  ;;  %478 = vmatpush.msra.mxu2 %v652_v17 }
  0x11   :  { %275 = vmatpush.msra.mxu1 %v659_v18  ;;  %486 = vmatpush.msra.mxu3 %v659_v18 }
  0x12   :  { %451 = vmatmul.msk.f32.vlgmr.msra.gmra.mxu0 %vm48_vm0, %v34_v19  ;;  %453 = vmatmul.msk.f32.vlgmr.msra.gmra.mxu2 %vm48_vm0, %v36_v20 }
  0x13   :  { %465 = vmatmul.msk.f32.vlgmr.msra.gmra.mxu1 %vm48_vm0, %v34_v19  ;;  %467 = vmatmul.msk.f32.vlgmr.msra.gmra.mxu3 %vm48_vm0, %v36_v20 }
  0x14   :  { %125 = vperm.xlu0 %490, %v492_v21   ;;  %101 = vperm.xlu1 %491, %v39_v22  }
  0x1a   :  { %452 = vmatmul.msk.f32.gmra.mxu0 %vm48_vm0, %v35_v23  ;;  %454 = vmatmul.msk.f32.gmra.mxu2 %vm48_vm0, %v37_v24 }
  0x1b   :  { %466 = vmatmul.msk.f32.gmra.mxu1 %vm48_vm0, %v35_v23  ;;  %468 = vmatmul.msk.f32.gmra.mxu3 %vm48_vm0, %v37_v24 }
  0x1c   :  { %92 = vperm.xlu0 %490, %v38_v25   ;;  %116 = vperm.xlu1 %491, %v113_v26  }
  0x86   :  { %v126_v27 = vpop.permute.xlu0 %125  ;;  %v102_v40 = vpop.permute.xlu1 %101 }
  0x8e   :  { %v93_v28 = vpop.permute.xlu0 %92 }
  0x8f   :  { %v78_v29 = vpop.f32.mrf.mxu0 }
  0x90   :  { %v95_v30 = vadd.f32 %v93_v28, %v78_v29  ;;  %v277_v31 = vpop.f32.mrf.mxu1 }
  0x91   :  { %v289_v32 = vadd.f32 %v277_v31, %v93_v28 }
  0x92   :  { %v97_v33 = vmul.f32 0.2, %v95_v30  ;;  %vm96_vm1 = vcmp.ge.f32.partialorder %v95_v30, 0.0 }
  0x93   :  { %v291_v35 = vmul.f32 0.2, %v289_v32  ;;  %vm290_vm2 = vcmp.ge.f32.partialorder %v289_v32, 0.0 }
  0x94   :  { %v98_v41 = vsel %vm96_vm1, %v95_v30, %v97_v33 }
  0x95   :  { %v84_v34 = vpop.f32.mrf.mxu2  ;;  %v292_v47 = vsel %vm290_vm2, %v289_v32, %v291_v35  ;;  %v104_v49 = vmul.f32 %v102_v40, %v98_v41 }
  0x96   :  { %v129_v36 = vadd.f32 %v126_v27, %v84_v34  ;;  %v283_v37 = vpop.f32.mrf.mxu3  ;;  %v293_v51 = vmul.f32 %v292_v47, %v102_v40 }
  0x97   :  { %v303_v38 = vadd.f32 %v283_v37, %v126_v27  ;;  %v81_v39 = vpop.f32.mrf.mxu0  ;;  %v106_v54 = vsel %vm105_vm3, %v104_v49, 0.0 }
  0x98   :  { %v456_v42 = vmul.f32 -1.442695, %v129_v36  ;;  %v128_v43 = vadd.f32 %v126_v27, %v81_v39  ;;  %v280_v44 = vpop.f32.mrf.mxu1  ;;  %v697_v59 = vsel %vm105_vm3, %v293_v51, 0.0  ;;  %v107_v63 = vrot.slane %v106_v54, 4 }
  0x99   :  { %v470_v45 = vmul.f32 -1.442695, %v303_v38  ;;  %v302_v46 = vadd.f32 %v280_v44, %v126_v27 }
  0x9a   :  { %493 = vpow2.f32 %v456_v42  ;;  %v455_v48 = vmul.f32 -1.442695, %v128_v43  ;;  %v713_v25 = vadd.f32 %v107_v63, %v106_v54 }
  0x9b   :  { %495 = vpow2.f32 %v470_v45  ;;  %v469_v50 = vmul.f32 -1.442695, %v302_v46 }
  0x9c   :  { %497 = vpow2.f32 %v455_v48 }
  0x9d   :  { %499 = vpow2.f32 %v469_v50  ;;  %v87_v52 = vpop.f32.mrf.mxu2 }
  0x9e   :  { %v185_v53 = vperm.slane %v87_v52, 0  ;;  %v200_v61 = vperm.slane %v87_v52, 1  ;;  %v704_v20 = vpop.f32.mrf.mxu3  ;;  %v230_v24 = vperm.slane %v87_v52, 3 }
  0x9f   :  { %v352_v28 = vperm.slane %v704_v20, 0  ;;  %v367_v30 = vperm.slane %v704_v20, 1  ;;  %v382_v31 = vperm.slane %v704_v20, 2  ;;  %v397_v33 = vperm.slane %v704_v20, 3 }
  0xa0   :  { %v494_v55 = vpop.eup %493  ;;  %v186_v56 = vsub.f32 %v652_v17, %v185_v53  ;;  %v187_v57 = vsub.f32 %v638_v15, %v185_v53  ;;  %v295_v15 = vrot.slane %v697_v59, 4  ;;  %v215_v17 = vperm.slane %v87_v52, 2 }
  0xa1   :  { %v496_v58 = vpop.eup %495  ;;  %v699_v60 = vadd.f32 1.0, %v494_v55  ;;  %v201_v23 = vsub.f32 %v624_v13, %v200_v61  ;;  %v202_v29 = vsub.f32 %v610_v11, %v200_v61  ;;  %v231_v11 = vsub.f32 %v562_v2, %v230_v24 }
  0xa2   :  { %v498_v62 = vpop.eup %497  ;;  %v701_v3 = vadd.f32 1.0, %v496_v58  ;;  %v188_v4 = vand.u32 2147483647, %v186_v56  ;;  %v189_v6 = vand.u32 2147483647, %v187_v57  ;;  %v216_v13 = vsub.f32 %v596_v9, %v215_v17 }
  0xa3   :  { %v500_v19 = vpop.eup %499  ;;  %501 = vrcp.f32 %v699_v60  ;;  %v708_v21 = vadd.f32 1.0, %v498_v62  ;;  %v217_v32 = vsub.f32 %v582_v7, %v215_v17  ;;  %v164_v35 = vand.u32 2147483648, %v699_v60 }
  0xa4   :  { %503 = vrcp.f32 %v701_v3  ;;  %v710_v22 = vadd.f32 1.0, %v500_v19  ;;  %v190_v26 = vsel %vm105_vm3, %v188_v4, 0.0  ;;  %v191_v27 = vsel %vm105_vm3, %v189_v6, 0.0 }
  0xa5   :  { %505 = vrcp.f32 %v708_v21  ;;  %v192_v36 = vadd.f32 %v191_v27, %v190_v26  ;;  %v203_v37 = vand.u32 2147483647, %v201_v23  ;;  %v162_v40 = vand.u32 2147483647, %v699_v60 }
  0xa6   :  { %507 = vrcp.f32 %v710_v22  ;;  %v338_v9 = vand.u32 2147483648, %v701_v3  ;;  %v232_v7 = vsub.f32 %v552_v0, %v230_v24  ;;  %vm158_vm4 = vweird.f32 %v699_v60 }
  0xa7   :  { %v193_v42 = vrot.slane %v192_v36, 4  ;;  %v204_v43 = vand.u32 2147483647, %v202_v29  ;;  %v336_v2 = vand.u32 2147483647, %v701_v3  ;;  %v205_v45 = vsel %vm105_vm3, %v203_v37, 0.0 }
  0xa8   :  { %v218_v46 = vand.u32 2147483647, %v216_v13  ;;  %v165_v48 = vor.u32 1.1754944e-38, %v164_v35  ;;  %v219_v0 = vand.u32 2147483647, %v217_v32  ;;  %vm748_vm5 = vcmp.eq.f32.partialorder %v162_v40, 8.507059e+37 }
  0xa9   :  { %v726_v34 = vpop.eup %501  ;;  %v194_v49 = vadd.f32 %v193_v42, %v192_v36  ;;  %v206_v50 = vsel %vm105_vm3, %v204_v43, 0.0  ;;  %v752_v54 = vor.u32 1.1754944e-38, %v338_v9  ;;  %v149_v19 = vand.u32 2147483648, %v708_v21 }
  0xaa   :  { %v730_v38 = vpop.eup %503  ;;  %v154_v39 = vmul.f32 %v726_v34, %v699_v60  ;;  %v207_v56 = vadd.f32 %v206_v50, %v205_v45  ;;  %vm159_vm6 = vweird.f32 %v726_v34  ;;  %v220_v6 = vsel %vm105_vm3, %v218_v46, 0.0 }
  0xab   :  { %v328_v41 = vmul.f32 %v730_v38, %v701_v3  ;;  %v742_v47 = vpop.eup %505  ;;  %v195_v61 = vrot.slane %v194_v49, 2  ;;  %v323_v17 = vand.u32 2147483648, %v710_v22  ;;  %v221_v23 = vsel %vm105_vm3, %v219_v0, 0.0  ;;  %vm769_vm7 = vmor %vm158_vm4, %vm159_vm6 }
  0xac   :  { %v155_v44 = vsub.f32 1.0, %v154_v39  ;;  %v745_v51 = vpop.eup %507  ;;  %v139_v55 = vmul.f32 %v742_v47, %v708_v21  ;;  %v208_v4 = vrot.slane %v207_v56, 4  ;;  %v233_v24 = vand.u32 2147483647, %v231_v11 }
  0xad   :  { %v329_v57 = vsub.f32 1.0, %v328_v41  ;;  %v313_v58 = vmul.f32 %v745_v51, %v710_v22  ;;  %v222_v13 = vadd.f32 %v221_v23, %v220_v6  ;;  %vm143_vm8 = vweird.f32 %v708_v21 }
  0xae   :  { %v156_v52 = vmul.f32 %v726_v34, %v155_v44  ;;  %v140_v63 = vsub.f32 1.0, %v139_v55  ;;  %v209_v29 = vadd.f32 %v208_v4, %v207_v56  ;;  %v147_v36 = vand.u32 2147483647, %v708_v21 }
  0xaf   :  { %v314_v27 = vsub.f32 1.0, %v313_v58  ;;  %v330_v35 = vmul.f32 %v730_v38, %v329_v57  ;;  %v321_v37 = vand.u32 2147483647, %v710_v22  ;;  %v780_v39 = vadd.f32 %v195_v61, %v194_v49 }
  0xb0   :  { %v157_v62 = vadd.f32 %v726_v34, %v156_v52  ;;  %v141_v26 = vmul.f32 %v742_v47, %v140_v63  ;;  %v210_v40 = vrot.slane %v209_v29, 2  ;;  %v223_v60 = vrot.slane %v222_v13, 4 }
  0xb1   :  { %v782_v9 = vor.u32 1.1754944e-38, %v149_v19  ;;  %v784_v41 = vor.u32 1.1754944e-38, %v323_v17  ;;  %v234_v42 = vand.u32 2147483647, %v232_v7  ;;  %v235_v43 = vsel %vm105_vm3, %v233_v24, 0.0 }
  0xb2   :  { %v161_v11 = vsel %vm769_vm7, %v726_v34, %v157_v62  ;;  %vm333_vm9 = vweird.f32 %v730_v38  ;;  %v142_v44 = vadd.f32 %v742_v47, %v141_v26  ;;  %vm144_vm10 = vweird.f32 %v742_v47 }
  0xb3   :  { %v315_v45 = vmul.f32 %v745_v51, %v314_v27  ;;  %v353_v34 = vsub.f32 %v659_v18, %v352_v28  ;;  %v796_v46 = vsel %vm748_vm5, %v165_v48, %v161_v11  ;;  %v799_v7 = vadd.f32 %v730_v38, %v330_v35  ;;  %vm809_vm12 = vmor %vm143_vm8, %vm144_vm10 }
  0xb4   :  { %v236_v49 = vsel %vm105_vm3, %v234_v42, 0.0  ;;  %v354_v50 = vsub.f32 %v645_v16, %v352_v28  ;;  %vm332_vm11 = vweird.f32 %v701_v3  ;;  %v197_v0 = vrot.slane %v780_v39, 1 }
  0xb5   :  { %v211_v52 = vadd.f32 %v210_v40, %v209_v29  ;;  %v224_v55 = vadd.f32 %v223_v60, %v222_v13  ;;  %v237_v18 = vadd.f32 %v236_v49, %v235_v43  ;;  %vm813_vm13 = vcmp.eq.f32.partialorder %v147_v36, 8.507059e+37  ;;  %vm863_vm2 = vmor %vm332_vm11, %vm333_vm9 }
  0xb6   :  { %vm318_vm14 = vweird.f32 %v745_v51  ;;  %v355_v16 = vand.u32 2147483647, %v353_v34  ;;  %v356_v28 = vand.u32 2147483647, %v354_v50  ;;  %v368_v56 = vsub.f32 %v631_v14, %v367_v30 }
  0xb7   :  { %v369_v21 = vsub.f32 %v617_v12, %v367_v30  ;;  %v146_v57 = vsel %vm809_vm12, %v742_v47, %v142_v44  ;;  %v828_v58 = vadd.f32 %v745_v51, %v315_v45  ;;  %v238_v61 = vrot.slane %v237_v18, 4 }
  0xb8   :  { %v383_v62 = vsub.f32 %v603_v10, %v382_v31  ;;  %vm317_vm15 = vweird.f32 %v710_v22  ;;  %v357_v14 = vsel %vm105_vm3, %v355_v16, 0.0  ;;  %v358_v63 = vsel %vm105_vm3, %v356_v28, 0.0 }
  0xb9   :  { %v370_v4 = vand.u32 2147483647, %v368_v56  ;;  %v371_v12 = vand.u32 2147483647, %v369_v21  ;;  %v212_v30 = vrot.slane %v211_v52, 1  ;;  %v225_v6 = vrot.slane %v224_v55, 2  ;;  %vm881_vm4 = vmor %vm317_vm15, %vm318_vm14 }
  0xba   :  { %v359_v19 = vadd.f32 %v358_v63, %v357_v14  ;;  %v384_v47 = vsub.f32 %v589_v8, %v382_v31  ;;  %v385_v10 = vand.u32 2147483647, %v383_v62  ;;  %v398_v24 = vsub.f32 %v572_v5, %v397_v33 }
  0xbb   :  { %v372_v17 = vsel %vm105_vm3, %v370_v4, 0.0  ;;  %v373_v23 = vsel %vm105_vm3, %v371_v12, 0.0  ;;  %vm846_vm0 = vcmp.eq.f32.partialorder %v336_v2, 8.507059e+37  ;;  %v239_v27 = vadd.f32 %v238_v61, %v237_v18 }
  0xbc   :  { %v360_v29 = vrot.slane %v359_v19, 4  ;;  %v374_v13 = vadd.f32 %v373_v23, %v372_v17  ;;  %v386_v32 = vand.u32 2147483647, %v384_v47  ;;  %v387_v8 = vsel %vm105_vm3, %v385_v10, 0.0 }
  0xbd   :  { %v399_v31 = vsub.f32 %v557_v1, %v397_v33  ;;  %v400_v35 = vand.u32 2147483647, %v398_v24  ;;  %vm854_vm1 = vcmp.eq.f32.partialorder %v321_v37, 8.507059e+37  ;;  %v226_v5 = vadd.f32 %v225_v6, %v224_v55 }
  0xbe   :  { %v361_v2 = vadd.f32 %v360_v29, %v359_v19  ;;  %v375_v11 = vrot.slane %v374_v13, 4  ;;  %v388_v40 = vsel %vm105_vm3, %v386_v32, 0.0  ;;  %v512_v37 = vmov 16.0  }
  0xbf   :  { %v389_v20 = vadd.f32 %v388_v40, %v387_v8  ;;  %v401_v1 = vand.u32 2147483647, %v399_v31  ;;  %v402_v33 = vsel %vm105_vm3, %v400_v35, 0.0  ;;  %509 = vrcp.f32 %v512_v37 }
  0xc0   :  { %v335_v42 = vsel %vm863_vm2, %v730_v38, %v799_v7  ;;  %v151_v43 = vsel %vm813_vm13, %v782_v9, %v146_v57  ;;  %v362_v3 = vrot.slane %v361_v2, 2  ;;  %v376_v44 = vadd.f32 %v375_v11, %v374_v13 }
  0xc1   :  { %v198_v45 = vadd.f32 %v197_v0, %v780_v39  ;;  %v240_v34 = vrot.slane %v239_v27, 2  ;;  %v390_v49 = vrot.slane %v389_v20, 4  ;;  %v403_v50 = vsel %vm105_vm3, %v401_v1, 0.0 }
  0xc2   :  { %v213_v38 = vadd.f32 %v212_v30, %v211_v52  ;;  %v363_v7 = vadd.f32 %v362_v3, %v361_v2  ;;  %v377_v18 = vrot.slane %v376_v44, 2  ;;  %v404_v9 = vadd.f32 %v403_v50, %v402_v33 }
  0xc3   :  { %v320_v39 = vsel %vm881_vm4, %v745_v51, %v828_v58  ;;  %v227_v0 = vrot.slane %v226_v5, 1  ;;  %v391_v48 = vadd.f32 %v390_v49, %v389_v20  ;;  %v168_v53 = vsel %vm105_vm3, %v151_v43, 0.0 }
  0xc4   :  { %v364_v16 = vrot.slane %v363_v7, 1  ;;  %v378_v28 = vadd.f32 %v377_v18, %v376_v44  ;;  %v405_v22 = vrot.slane %v404_v9, 4  ;;  %v169_v56 = vsel %vm105_vm3, %v796_v46, 0.0 }
  0xc5   :  { %v510_v21 = vpop.eup %509  ;;  %v340_v52 = vsel %vm846_vm0, %v752_v54, %v335_v42  ;;  %v241_v57 = vadd.f32 %v240_v34, %v239_v27  ;;  %v392_v61 = vrot.slane %v391_v48, 2  ;;  %v170_v62 = vadd.f32 %v169_v56, %v168_v53 }
  0xc6   :  { %v379_v14 = vrot.slane %v378_v28, 1  ;;  %v406_v51 = vadd.f32 %v405_v22, %v404_v9  ;;  %v178_v58 = vmul.f32 16.0, %v510_v21  ;;  %v214_v63 = vadd.f32 %v213_v38, %v198_v45 }
  0xc7   :  { %v325_v4 = vsel %vm854_vm1, %v784_v41, %v320_v39  ;;  %v365_v12 = vadd.f32 %v364_v16, %v363_v7  ;;  %v393_v30 = vadd.f32 %v392_v61, %v391_v48  ;;  %v171_v6 = vrot.slane %v170_v62, 4  ;;  %v117_v48 = vpop.permute.xlu1 %116 }
  0xc8   :  { %v380_v46 = vadd.f32 %v379_v14, %v378_v28  ;;  %v407_v19 = vrot.slane %v406_v51, 2  ;;  %v179_v47 = vsub.f32 1.0, %v178_v58  ;;  %v228_v17 = vadd.f32 %v227_v0, %v226_v5 }
  0xc9   :  { %v296_v54 = vadd.f32 %v295_v15, %v697_v59  ;;  %v394_v23 = vrot.slane %v393_v30, 1  ;;  %v172_v10 = vadd.f32 %v171_v6, %v170_v62  ;;  %v242_v24 = vrot.slane %v241_v57, 1 }
  0xca   :  { %v408_v26 = vadd.f32 %v407_v19, %v406_v51  ;;  %v180_v27 = vmul.f32 %v510_v21, %v179_v47  ;;  %v229_v29 = vadd.f32 %v228_v17, %v214_v63  ;;  %v342_v13 = vsel %vm105_vm3, %v325_v4, 0.0 }
  0xcb   :  { %vm182_vm5 = vweird.f32 %v510_v21  ;;  %v173_v41 = vrot.slane %v172_v10, 2  ;;  %v243_v32 = vadd.f32 %v242_v24, %v241_v57  ;;  %v343_v8 = vsel %vm105_vm3, %v340_v52, 0.0 }
  0xcc   :  { %v181_v31 = vadd.f32 %v510_v21, %v180_v27  ;;  %v344_v35 = vadd.f32 %v343_v8, %v342_v13  ;;  %v381_v36 = vadd.f32 %v380_v46, %v365_v12  ;;  %v395_v5 = vadd.f32 %v394_v23, %v393_v30 }
  0xcd   :  { %v174_v2 = vadd.f32 %v173_v41, %v172_v10  ;;  %v409_v11 = vrot.slane %v408_v26, 1  ;;  %v109_v59 = vrot.slane %v713_v25, 2  ;;  %v244_v15 = vadd.f32 %v243_v32, %v229_v29 }
  0xce   :  { %v345_v40 = vrot.slane %v344_v35, 4  ;;  %v297_v60 = vrot.slane %v296_v54, 2  ;;  %v183_v20 = vsel %vm182_vm5, %v510_v21, %v181_v31  ;;  %vm31_vm6 = vcmask 123904  }
  0xcf   :  { %v175_v1 = vrot.slane %v174_v2, 1  ;;  %v396_v37 = vadd.f32 %v395_v5, %v381_v36  ;;  %v410_v42 = vadd.f32 %v409_v11, %v408_v26  ;;  %v513_v3 = vmov 0.0  }
  0xd0   :  { %v346_v33 = vadd.f32 %v345_v40, %v344_v35  ;;  %32 = vst.msk [vmem:[#allocation2] sm:$0x3] %vm31_vm6, %v513_v3  ;;  %v110_v44 = vadd.f32 %v109_v59, %v713_v25  ;;  %v245_v45 = vmul.f32 0.015625, %v244_v15  ;;  %v298_v50 = vadd.f32 %v297_v60, %v296_v54 }
  0xd1   :  { %v176_v43 = vadd.f32 %v175_v1, %v174_v2  ;;  %33 = vst.msk [vmem:[#allocation3] sm:$0x3] %vm31_vm6, %v513_v3  ;;  %v411_v38 = vadd.f32 %v410_v42, %v396_v37  ;;  %v422_v0 = vlaneseq  ;;  %v119_v25 = vperm.slane %v117_v48, 0 }
  0xd2   :  { %v347_v34 = vrot.slane %v346_v33, 2  ;;  %v111_v18 = vrot.slane %v110_v44, 1  ;;  %v247_v9 = vmul.f32 0.3, %v245_v45  ;;  %v299_v16 = vrot.slane %v298_v50, 1 }
  0xd3   :  { %v184_v49 = vmul.f32 %v183_v20, %v176_v43  ;;  %v412_v22 = vmul.f32 0.015625, %v411_v38  ;;  %v423_v52 = vand.u32 127, %v422_v0  ;;  %vm418_vm3 = vcmask 1040384  }
  0xd4   :  { %v348_v55 = vadd.f32 %v347_v34, %v346_v33  ;;  %v112_v56 = vadd.f32 %v111_v18, %v110_v44  ;;  %v300_v61 = vadd.f32 %v299_v16, %v298_v50 }
  0xd5   :  { %v246_v7 = vmul.f32 0.5, %v184_v49  ;;  %v414_v14 = vmul.f32 0.3, %v412_v22  ;;  %vm426_vm7 = vcmp.lt.s32.totalorder %v423_v52, 16 }
  0xd6   :  { %v349_v39 = vrot.slane %v348_v55, 1  ;;  %v120_v51 = vadd.f32 %v119_v25, %v112_v56  ;;  %v301_v4 = vadd.f32 %v300_v61, %v119_v25 }
  0xd7   :  { %v248_v53 = vadd.f32 %v247_v9, %v246_v7  ;;  %v427_v47 = vld [vmem:[#allocation2] sm:$0x3] }
  0xd8   :  { %v350_v28 = vadd.f32 %v349_v39, %v348_v55  ;;  %v434_v30 = vld [vmem:[#allocation3] sm:$0x3] }
  0xd9   :  { %v249_v57 = vadd.f32 1.0, %v248_v53 }
  0xda   :  { %v351_v21 = vmul.f32 %v350_v28, %v183_v20 }
  0xdb   :  { %v250_v63 = vmul.f32 %v249_v57, %v120_v51 }
  0xdc   :  { %v413_v62 = vmul.f32 0.5, %v351_v21 }
  0xde   :  { %v415_v58 = vadd.f32 %v414_v14, %v413_v62 }
  0xe0   :  { %v416_v12 = vadd.f32 1.0, %v415_v58 }
  0xe2   :  { %v417_v6 = vmul.f32 %v416_v12, %v301_v4  ;;  %v420_v46 = vsel %vm418_vm3, %v249_v57, %v416_v12 }
  0xe3   :  { %v435_v19 = vsel %vm426_vm7, %v420_v46, 0.0 }
  0xe4   :  { %v419_v17 = vsel %vm418_vm3, %v250_v63, %v417_v6  ;;  %v436_v54 = vadd.f32 %v435_v19, %v434_v30 }
  0xe5   :  { %v430_v23 = vsel %vm426_vm7, %v419_v17, 0.0 }
  0xe6   :  { %v431_v10 = vadd.f32 %v430_v23, %v427_v47  ;;  %437 = vst.msk [vmem:[#allocation3] sm:$0x3] %vm31_vm6, %v436_v54 }
  0xe8   :  { %433 = vst.msk [vmem:[#allocation2] sm:$0x3] %vm31_vm6, %v431_v10 }
  0xef   :  { %v441_v24 = vld [vmem:[#allocation2] sm:$0x3] }
  0xf0   :  { %v442_v26 = vsel %vm31_vm6, %v441_v24, 0.0 }
  0xf1   :  { %443 = vadd.xlane.f32.xlu2 %v442_v26 }
 0x164   :  { %v444_v27 = vpop.xlane.xlu2 %443 }
 0x165   :  { %v445_v29 = vmul.f32 0.0625, %v444_v27 }
 0x167   :  { %446 = vst [vmem:[%s919_s6] sm:$0x3] %v445_v29 }

</bundles_post_ra>
